<compile_context>
chip_gen: v6e
topology: v6e:2x2x1
jax: 0.10.0
libtpu: 0.0.40
codegen_flags: <defaults>
</compile_context>

<pallas_src>
import jax
import jax.numpy as jnp
from jax.experimental import pallas as pl
from jax.experimental.pallas import tpu as pltpu


def _linear_kernel(wb_ref, x_ref, o_ref):
    # wb_ref: SMEM (2,) scalars [w, b]; x_ref/o_ref: (TILE_ROWS, 128) VMEM tiles.
    w = wb_ref[0]
    b = wb_ref[1]
    o_ref[...] = (x_ref[...] * w + b).astype(o_ref.dtype)


def linear_regression_forward(x, w, b, *, max_tile_rows=1024):
    """Pallas TPU forward for nn.Linear(1, 1): y = x @ W^T + b == x * w + b.

    Args:
      x: (N, 1) float32
      w: (1, 1) float32  (out_features, in_features), PyTorch convention
      b: (1,)   float32
    Returns:
      (N, 1) float32
    """
    n = x.shape[0]
    dtype = x.dtype
    lanes = 128

    # Lane-dense slab: flatten, pad to a whole number of (tile_rows, 128) tiles.
    rows = -(-n // lanes)                       # ceil(n / 128)
    rows8 = -(-rows // 8) * 8                   # sublane-aligned row count
    tile_rows = min(max_tile_rows, rows8)
    padded_rows = -(-rows8 // tile_rows) * tile_rows
    total = padded_rows * lanes

    flat = jnp.pad(x.reshape(-1), (0, total - n))
    slab = flat.reshape(padded_rows, lanes)

    # Pack w and b as SMEM scalars (scalar prefetch).
    wb = jnp.concatenate([w.reshape(-1), b.reshape(-1)]).astype(jnp.float32)

    grid = (padded_rows // tile_rows,)

    out = pl.pallas_call(
        _linear_kernel,
        out_shape=jax.ShapeDtypeStruct((padded_rows, lanes), dtype),
        grid_spec=pltpu.PrefetchScalarGridSpec(
            num_scalar_prefetch=1,
            grid=grid,
            in_specs=[
                pl.BlockSpec((tile_rows, lanes), lambda i, wb_ref: (i, 0)),
            ],
            out_specs=pl.BlockSpec((tile_rows, lanes), lambda i, wb_ref: (i, 0)),
        ),
        compiler_params=pltpu.CompilerParams(
            dimension_semantics=("parallel",),
        ),
        cost_estimate=pl.CostEstimate(
            flops=2 * n, transcendentals=0, bytes_accessed=8 * n),
    )(wb, slab)

    # Restore exact (N, 1) output shape.
    return out.reshape(-1)[:n].reshape(n, 1)


if __name__ == "__main__":
    key = jax.random.PRNGKey(0)
    kx, kw, kb = jax.random.split(key, 3)

    # nn.Linear(1,1) init: fan_in = 1 -> bound = 1, W,b ~ U(-1, 1).
    w = jax.random.uniform(kw, (1, 1), jnp.float32, minval=-1.0, maxval=1.0)
    b = jax.random.uniform(kb, (1,), jnp.float32, minval=-1.0, maxval=1.0)

    # Small input consistent with the forward: batch=8, in_features=1.
    x = jax.random.normal(kx, (8, 1), jnp.float32)

    y = linear_regression_forward(x, w, b)
    y = jax.block_until_ready(y)

    # Reference check in plain JAX.
    y_ref = x @ w.T + b
    assert y.shape == (8, 1)
    assert jnp.allclose(y, y_ref, atol=1e-6), (y, y_ref)

    # Also sanity-check a batch that is not a multiple of 128 (tail padding path).
    x2 = jax.random.normal(kx, (300, 1), jnp.float32)
    y2 = jax.block_until_ready(linear_regression_forward(x2, w, b))
    assert y2.shape == (300, 1)
    assert jnp.allclose(y2, x2 @ w.T + b, atol=1e-6)

    print("KERNEL_OK")
</pallas_src>

<mosaic_0001>
module attributes {stable_mosaic.version = 11 : i64} {
  func.func @_linear_kernel(%arg0: i32, %arg1: memref<2xf32, #tpu.memory_space<smem>>, %arg2: memref<8x128xf32, #tpu.memory_space<vmem>>, %arg3: memref<8x128xf32, #tpu.memory_space<vmem>>) attributes {dimension_semantics = [#tpu.dimension_semantics<parallel>], iteration_bounds = array<i64: 1>, scalar_prefetch = 1 : i64, scratch_operands = 0 : i64, tpu.core_type = #tpu.core_type<tc>, window_params = [{transform_indices = @transform_0, window_bounds = array<i64: 8, 128>}, {transform_indices = @transform_1, window_bounds = array<i64: 8, 128>}]} {
    %c0 = arith.constant 0 : index
    %0 = memref.load %arg1[%c0] : memref<2xf32, #tpu.memory_space<smem>>
    %c1 = arith.constant 1 : index
    %1 = memref.load %arg1[%c1] : memref<2xf32, #tpu.memory_space<smem>>
    %c0_0 = arith.constant 0 : index
    %c0_1 = arith.constant 0 : index
    %2 = vector.load %arg2[%c0_0, %c0_1] : memref<8x128xf32, #tpu.memory_space<vmem>>, vector<8x128xf32>
    %3 = vector.broadcast %0 : f32 to vector<8x128xf32>
    %4 = arith.mulf %2, %3 : vector<8x128xf32>
    %5 = vector.broadcast %1 : f32 to vector<8x128xf32>
    %6 = arith.addf %4, %5 : vector<8x128xf32>
    %c0_2 = arith.constant 0 : index
    %c0_3 = arith.constant 0 : index
    %7 = vector.load %arg3[%c0_2, %c0_3] : memref<8x128xf32, #tpu.memory_space<vmem>>, vector<8x128xf32>
    tpu.vector_store %arg3[%c0_2, %c0_3], %6 {strides = array<i32>} : memref<8x128xf32, #tpu.memory_space<vmem>>, vector<8x128xf32>,
    return
  }
  func.func @transform_0(%arg0: i32, %arg1: memref<2xf32, #tpu.memory_space<smem>>) -> (i32, i32) {
    %c0_i32 = arith.constant 0 : i32
    %c0_i32_0 = arith.constant 0 : i32
    return %arg0, %c0_i32 : i32, i32
  }
  func.func @transform_1(%arg0: i32, %arg1: memref<2xf32, #tpu.memory_space<smem>>) -> (i32, i32) {
    %c0_i32 = arith.constant 0 : i32
    %c0_i32_0 = arith.constant 0 : i32
    return %arg0, %c0_i32 : i32, i32
  }
}

</mosaic_0001>

<bundles_post_ra>
// kernel: tpu_custom_call.1
= control target key start
LH: loop header
LB: loop body
LE: loop exit
PB: predicated region body
PF: predicated region fallthrough
CT: control target
= control target key end

     0   :  { %s107_s9 = smov [#allocation3]   ;;  %s134_s0 = inlined_call_operand.hbm [shape: f32[2], index: 0, kind: input, shape index: {}]   ;;  %s135_s1 = inlined_call_operand.hbm [shape: f32[8,128], index: 1, kind: input, shape index: {}]   ;;  %s136_s2 = inlined_call_operand.hbm [shape: f32[8,128], index: 2, kind: output, shape index: {}]  }
   0x1   :  { %8 = dma.hbm_to_smem %s134_s0, 16, %s107_s9, [#allocation2] }
   0x2   :  { %101 = dma.done.wait [#allocation2], 16 }
   0x3   :  { %102 = vsyncadd [#allocation2], 4294967280 }
   0x4   :  { %10 = sfence }
   0x5   :  { %11 = vsyncpa [#allocation5], 0 }
   0x6   :  { %12 = vsyncpa [#allocation6], 0  ;;  %s108_s12 = smov [#allocation4]  }
   0x7   :  { %s19_s13 = sshll.u32 %s108_s12, 4  ;;  %s20_s13 = int_to_ptr.vmem [resolvable:$true] %s19_s13 }
   0x8   :  { %s69_s14 = scalar_lea.vmem %s20_s13, 128  ;;  %p74_p1 = scmp.lt.s32.totalorder %s20_s13, %s20_s13 }
   0x9   :  { %p70_p0 = scmp.ne.s32.totalorder %s20_s13, %s69_s14  ;;  %p75_p2 = scmp.lt.s32.totalorder %s69_s14, %s69_s14 }
   0xb   :  { %p76_p3 = por %p75_p2, %p74_p1 }
   0xd   :  { %p77_p4 = pnand %p76_p3, %p70_p0 }
   0xf   :  { %80 = shalt.err (!%p77_p4)
}
  0x10   :  { %22 = dma.hbm_to_vmem [thread:$0]  %s135_s1, 128, %s20_s13, [#allocation5]  }
  0x11   :  { %103 = dma.done.wait [#allocation5], 128  }
  0x12   :  { %104 = vsyncadd [#allocation5], 4294967168  ;;  %s26_s0 = sld [smem:[#allocation3]]  ;;  %v28_v0 = vld [vmem:[#allocation4] sm:$0xff]  ;;  %s109_s18 = smov [#allocation7]  }
  0x13   :  { %s49_s17 = sld [smem:[#allocation3 + $0x1]]  ;;  %s40_s19 = sshll.u32 %s109_s18, 4  ;;  %s41_s19 = int_to_ptr.vmem [resolvable:$true] %s40_s19 }
  0x14   :  { %s81_s20 = scalar_lea.vmem %s41_s19, 128  ;;  %p86_p6 = scmp.lt.s32.totalorder %s41_s19, %s41_s19 }
  0x15   :  { %p82_p5 = scmp.ne.s32.totalorder %s41_s19, %s81_s20  ;;  %p87_p7 = scmp.lt.s32.totalorder %s81_s20, %s81_s20 }
  0x17   :  { %p88_p8 = por %p87_p7, %p86_p6 }
  0x18   :  { %v29_v1 = vstv %s26_s0 }
  0x19   :  { %v30_v2 = vmul.f32 %v29_v1, %v28_v0  ;;  %v31_v3 = vstv %s49_s17  ;;  %p89_p9 = pnand %p88_p8, %p82_p5 }
  0x1b   :  { %v32_v4 = vadd.f32 %v31_v3, %v30_v2 }
  0x1d   :  { %33 = vst [vmem:[#allocation7] sm:$0xff] %v32_v4 }
  0x1e   :  { %92 = shalt.err (!%p89_p9)
}
  0x1f   :  { %43 = dma.vmem_to_hbm [thread:$0]  %s41_s19, 128, %s136_s2, [#allocation6]  }
  0x20   :  { %105 = dma.done.wait [#allocation6], 128  }
  0x21   :  { %106 = vsyncadd [#allocation6], 4294967168 }
  0x22   :  { %47 = vsyncpa [#allocation5], 1 }
  0x23   :  { %48 = vsyncpa [#allocation6], 1 }

</bundles_post_ra>
